<compile_context>
chip_gen: v6e
topology: v6e:2x2x1
jax: 0.10.0
libtpu: 0.0.40
codegen_flags: <defaults>
</compile_context>

<pallas_src>
import functools

import jax
import jax.numpy as jnp
from jax.experimental import pallas as pl
from jax.experimental.pallas import tpu as pltpu


def _ceil_to(x, m):
    return ((x + m - 1) // m) * m


def _patch_embed_kernel(patches_ref, w_ref, add_ref, out_ref):
    # patches_ref: (Bt, TM, K_pad) bf16 — Bt images x TM patch rows
    #              (row 0 of each image is a zero "cls slot" row).
    # w_ref:       (K_pad, E_pad)  bf16 — resident projection weight.
    # add_ref:     (TM, E_pad)     f32  — pos_embed + [cls ; bias], batch-indep.
    # out_ref:     (Bt, TM, E_pad) out dtype.
    bt, tm, k_pad = patches_ref.shape
    e_pad = out_ref.shape[-1]
    # Leading-dim merge is a free view (TM is a multiple of the sublane tile).
    lhs = patches_ref[...].reshape(bt * tm, k_pad)
    proj = jnp.dot(lhs, w_ref[...], preferred_element_type=jnp.float32)
    out = proj.reshape(bt, tm, e_pad) + add_ref[...][None]
    out_ref[...] = out.astype(out_ref.dtype)


def patch_embedding_forward(x, conv_w, conv_b, cls_token, pos_embed, patch_size,
                            *, out_dtype=jnp.float32, return_padded=False):
    """x: (B, C, H, W) float32 (NCHW, like PyTorch). Returns (B, N+1, E)."""
    B, C, H, W = x.shape
    p = patch_size
    E = conv_w.shape[0]
    nh, nw = H // p, W // p
    N = nh * nw
    K = C * p * p

    # ---- padded / tiled dims ----
    SUB = 16                                   # bf16-safe sublane alignment
    rows_base = _ceil_to(N + 1, SUB)
    TM = min(256, rows_base)                   # MXU-sized row tile
    rows_pad = _ceil_to(N + 1, TM)
    tiles_per_batch = rows_pad // TM
    K_pad = _ceil_to(K, 128)
    E_pad = _ceil_to(E, 128)
    out_itemsize = jnp.dtype(out_dtype).itemsize

    # ---- choose Bt (batch images per grid step) ----
    def _vmem_bytes(bt):
        patches_b = bt * TM * K_pad * 2 * 2          # bf16, double buffered
        out_b = bt * TM * E_pad * out_itemsize * 2
        w_b = K_pad * E_pad * 2 * 2
        add_b = TM * E_pad * 4 * 2
        return patches_b + out_b + w_b + add_b

    total_steps_max = B * tiles_per_batch
    min_steps = min(8, total_steps_max)        # keep >=2 steps per TC (v7x megacore)
    Bt = 1
    for cand in (8, 4, 2):
        if (B % cand == 0
                and (B // cand) * tiles_per_batch >= min_steps
                and _vmem_bytes(cand) <= 24 * 1024 * 1024):
            Bt = cand
            break

    # ---- glue (pure layout, no FLOPs) ----
    # Single fused bf16 staging pass: cast -> space-to-depth transpose -> pad.
    xb = x.astype(jnp.bfloat16)
    patches = xb.reshape(B, C, nh, p, nw, p)
    patches = patches.transpose(0, 2, 4, 1, 3, 5)             # (B, nh, nw, C, p, p)
    patches = patches.reshape(B, N, K)                        # (B, N, K) bf16
    # Prepend a zero row (cls slot), pad rows to rows_pad and K to K_pad.
    patches = jnp.pad(patches,
                      ((0, 0), (1, rows_pad - (N + 1)), (0, K_pad - K)))

    # Conv weight (E, C, p, p) -> (K, E) bf16, lane/sublane padded.
    w_mat = conv_w.reshape(E, K).T.astype(jnp.bfloat16)
    w_mat = jnp.pad(w_mat, ((0, K_pad - K), (0, E_pad - E)))   # (K_pad, E_pad)

    # Batch-independent additive tensor: pos_embed + [cls_token ; bias].
    add = pos_embed.reshape(N + 1, E) + jnp.concatenate(
        [cls_token.reshape(1, E),
         jnp.broadcast_to(conv_b.reshape(1, E), (N, E))], axis=0)
    add = jnp.pad(add.astype(jnp.float32),
                  ((0, rows_pad - (N + 1)), (0, E_pad - E)))   # (rows_pad, E_pad)

    cost = pl.CostEstimate(
        flops=2 * B * rows_pad * K_pad * E_pad,
        transcendentals=0,
        bytes_accessed=(B * rows_pad * K_pad * 2            # patches read
                        + K_pad * E_pad * 2                  # weight read
                        + rows_pad * E_pad * 4               # add read
                        + B * rows_pad * E_pad * out_itemsize))  # out write

    out = pl.pallas_call(
        _patch_embed_kernel,
        out_shape=jax.ShapeDtypeStruct((B, rows_pad, E_pad), out_dtype),
        grid_spec=pltpu.PrefetchScalarGridSpec(
            num_scalar_prefetch=0,
            # Row-tile axis outer, batch inner: `add` block index is constant
            # over the inner loop, so it is not re-fetched per batch step.
            grid=(tiles_per_batch, B // Bt),
            in_specs=[
                pl.BlockSpec((Bt, TM, K_pad), lambda m, b: (b, m, 0)),
                pl.BlockSpec((K_pad, E_pad), lambda m, b: (0, 0)),
                pl.BlockSpec((TM, E_pad), lambda m, b: (m, 0)),
            ],
            out_specs=pl.BlockSpec((Bt, TM, E_pad), lambda m, b: (b, m, 0)),
        ),
        compiler_params=pltpu.CompilerParams(
            dimension_semantics=("parallel", "parallel")),
        cost_estimate=cost,
    )(patches, w_mat, add)

    if return_padded:
        # Padded block; valid data lives at [:, :N+1, :E].  Lets the consumer
        # fuse the slice instead of paying a full HBM round trip here.
        return out
    if rows_pad != N + 1 or E_pad != E:
        out = out[:, :N + 1, :E]
    return out


if __name__ == "__main__":
    # Small shapes consistent with the module:
    # batch=2, in_channels=4, image 16x16, patch_size=4 -> num_patches=16, embed_dim=32
    B, C, H, W = 2, 4, 16, 16
    patch_size = 4
    embed_dim = 32
    num_patches = (H // patch_size) * (W // patch_size)

    key = jax.random.PRNGKey(0)
    kx, kw, kb, kc, kp = jax.random.split(key, 5)

    x = jax.random.normal(kx, (B, C, H, W), dtype=jnp.float32)
    conv_w = jax.random.normal(
        kw, (embed_dim, C, patch_size, patch_size), dtype=jnp.float32) * 0.02
    conv_b = jax.random.normal(kb, (embed_dim,), dtype=jnp.float32) * 0.02
    cls_token = jax.random.normal(kc, (1, 1, embed_dim), dtype=jnp.float32)
    pos_embed = jax.random.normal(
        kp, (1, num_patches + 1, embed_dim), dtype=jnp.float32)

    fwd = jax.jit(functools.partial(patch_embedding_forward,
                                    patch_size=patch_size))
    out = jax.block_until_ready(fwd(x, conv_w, conv_b, cls_token, pos_embed))

    # Pure-JAX f32 reference (conv via dot on patches). Tolerance loosened for
    # the bf16 MXU path (f32 accumulation keeps the error ~1e-3..1e-2).
    patches_ref = x.reshape(B, C, H // patch_size, patch_size,
                            W // patch_size, patch_size)
    patches_ref = patches_ref.transpose(0, 2, 4, 1, 3, 5).reshape(
        B, num_patches, C * patch_size * patch_size)
    proj_ref = patches_ref @ conv_w.reshape(embed_dim, -1).T + conv_b
    ref = jnp.concatenate(
        [jnp.broadcast_to(cls_token, (B, 1, embed_dim)), proj_ref], axis=1)
    ref = ref + pos_embed

    assert out.shape == (B, num_patches + 1, embed_dim)
    assert jnp.allclose(out, ref, atol=3e-2, rtol=3e-2)

    print("KERNEL_OK")
</pallas_src>

<mosaic_0001>
module attributes {stable_mosaic.version = 11 : i64} {
  func.func @_patch_embed_kernel(%arg0: i32, %arg1: i32, %arg2: memref<1x32x128xbf16, #tpu.memory_space<vmem>>, %arg3: memref<128x128xbf16, #tpu.memory_space<vmem>>, %arg4: memref<32x128xf32, #tpu.memory_space<vmem>>, %arg5: memref<1x32x128xf32, #tpu.memory_space<vmem>>) attributes {dimension_semantics = [#tpu.dimension_semantics<parallel>, #tpu.dimension_semantics<parallel>], iteration_bounds = array<i64: 1, 2>, scalar_prefetch = 0 : i64, scratch_operands = 0 : i64, tpu.core_type = #tpu.core_type<tc>, window_params = [{transform_indices = @transform_0, window_bounds = array<i64: 1, 32, 128>}, {pipeline_mode = #tpu.pipeline_mode<synchronous>, transform_indices = @transform_1, window_bounds = array<i64: 128, 128>}, {transform_indices = @transform_2, window_bounds = array<i64: 32, 128>}, {transform_indices = @transform_3, window_bounds = array<i64: 1, 32, 128>}]} {
    %c0 = arith.constant 0 : index
    %c0_0 = arith.constant 0 : index
    %c0_1 = arith.constant 0 : index
    %0 = vector.load %arg2[%c0, %c0_0, %c0_1] : memref<1x32x128xbf16, #tpu.memory_space<vmem>>, vector<1x32x128xbf16>
    %1 = vector.shape_cast %0 : vector<1x32x128xbf16> to vector<32x128xbf16>
    %c0_2 = arith.constant 0 : index
    %c0_3 = arith.constant 0 : index
    %2 = vector.load %arg3[%c0_2, %c0_3] : memref<128x128xbf16, #tpu.memory_space<vmem>>, vector<128x128xbf16>
    %cst = arith.constant dense<0.000000e+00> : vector<32x128xf32>
    %3 = tpu.matmul %1, %2, %cst {dimension_numbers = #tpu.dot_dimension_numbers<[1], [0], [0], [1], [0, 0, 1, 1], [], []>} : vector<32x128xbf16>, vector<128x128xbf16>, vector<32x128xf32> -> vector<32x128xf32>
    %4 = vector.shape_cast %3 : vector<32x128xf32> to vector<1x32x128xf32>
    %c0_4 = arith.constant 0 : index
    %c0_5 = arith.constant 0 : index
    %5 = vector.load %arg4[%c0_4, %c0_5] : memref<32x128xf32, #tpu.memory_space<vmem>>, vector<32x128xf32>
    %6 = vector.shape_cast %5 : vector<32x128xf32> to vector<1x32x128xf32>
    %7 = arith.addf %4, %6 : vector<1x32x128xf32>
    %c0_6 = arith.constant 0 : index
    %c0_7 = arith.constant 0 : index
    %c0_8 = arith.constant 0 : index
    %8 = vector.load %arg5[%c0_6, %c0_7, %c0_8] : memref<1x32x128xf32, #tpu.memory_space<vmem>>, vector<1x32x128xf32>
    tpu.vector_store %arg5[%c0_6, %c0_7, %c0_8], %7 {strides = array<i32>} : memref<1x32x128xf32, #tpu.memory_space<vmem>>, vector<1x32x128xf32>,
    return
  }
  func.func @transform_0(%arg0: i32, %arg1: i32) -> (i32, i32, i32) {
    %c0_i32 = arith.constant 0 : i32
    %c0_i32_0 = arith.constant 0 : i32
    return %arg1, %arg0, %c0_i32 : i32, i32, i32
  }
  func.func @transform_1(%arg0: i32, %arg1: i32) -> (i32, i32) {
    %c0_i32 = arith.constant 0 : i32
    %c0_i32_0 = arith.constant 0 : i32
    %c0_i32_1 = arith.constant 0 : i32
    return %c0_i32, %c0_i32_0 : i32, i32
  }
  func.func @transform_2(%arg0: i32, %arg1: i32) -> (i32, i32) {
    %c0_i32 = arith.constant 0 : i32
    %c0_i32_0 = arith.constant 0 : i32
    return %arg0, %c0_i32 : i32, i32
  }
  func.func @transform_3(%arg0: i32, %arg1: i32) -> (i32, i32, i32) {
    %c0_i32 = arith.constant 0 : i32
    %c0_i32_0 = arith.constant 0 : i32
    return %arg1, %arg0, %c0_i32 : i32, i32, i32
  }
}

</mosaic_0001>

<bundles_post_ra>
// kernel: patch_embedding_forward.1
= control target key start
LH: loop header
LB: loop body
LE: loop exit
PB: predicated region body
PF: predicated region fallthrough
CT: control target
= control target key end

     0   :  { %s608_s12 = smov 0   ;;  %s610_s13 = smov 0   ;;  %s681_s0 = inlined_call_operand.vmem [shape: bf16[2,32,128], index: 0, kind: input, shape index: {}]   ;;  %s682_s1 = inlined_call_operand.vmem [shape: bf16[128,128], index: 1, kind: input, shape index: {}]   ;;  %s683_s2 = inlined_call_operand.vmem [shape: f32[32,128], index: 2, kind: input, shape index: {}]   ;;  %s684_s3 = inlined_call_operand.vmem [shape: f32[2,32,128], index: 3, kind: output, shape index: {}]  }
   0x1   :  { %s612_s14 = smov 0  }
   0x2 LB: > { %s22_s15 = sadd.s32 1, %s582_s13  ;;  %p481_p0 = scmp.ge.s32.totalorder %s586_s14, 1  ;;  %s586_s14 = sphi %s612_s14, %s13_s14   ;;  %s582_s13 = sphi %s610_s13, %s686_s13   ;;  %s578_s12 = sphi %s608_s12, %s685_s12  }
   0x3   : > { %p23_p1 = scmp.ge.s32.totalorder %s22_s15, 2  ;;  %p169_p2 = scmp.lt.s32.totalorder %s586_s14, 3 }
   0x5   : > { %s688_s15 = smov (%p23_p1, %s22_s15), 0  ;;  %p170_p3 = pnand %p481_p0, %p169_p2 }
   0x6   : > { %p207_p4 = scmp.lt.s32.totalorder (!%p170_p3), %s578_s12, 1 }
   0x7   : > { %173 = sbr.rel (%p170_p3) target bundleno = 247 (0xf7), region = 32 }
   0xc   : > { %v554_v0 = vld [vmem:[%s682_s1 + $0x38] sm:$0xff]   ;;  %v555_v1 = vld [vmem:[%s682_s1 + $0x30] sm:$0xff]   ;;  %s690_s12 = smov (!%p207_p4, %s578_s12), 1  ;;  %v556_v2 = vld [vmem:[%s682_s1 + $0x28] sm:$0xff]  }
   0xd   : > { %510 = vmatprep.subr.bf16.mxu0 %v554_v0  ;;  %s498_s22 = sshll.u32 %s690_s12, 4  ;;  %v557_v3 = vld [vmem:[%s682_s1 + $0x20] sm:$0xff]   ;;  %v558_v5 = vld [vmem:[%s682_s1 + $0x18] sm:$0xff]   ;;  %v559_v6 = vld [vmem:[%s682_s1 + $0x10] sm:$0xff]   ;;  %s499_s9 = sshll.u32 %s690_s12, 5 }
   0xe   : > { %511 = vmatpush3.bf16.msra.mxu0 %v554_v0  ;;  %s214_s25 = scalar_lea.vmem %s681_s0, %s498_s22  ;;  %v560_v7 = vld [vmem:[%s682_s1 + $0x8] sm:$0xff]   ;;  %v561_v8 = vld [vmem:[%s682_s1] sm:$0xff]   ;;  %v364_v10 = vld [vmem:[%s683_s2 + $0x10] sm:$0xff]  ;;  %s230_s18 = scalar_lea.vmem %s684_s3, %s499_s9 }
   0xf   : > { %512 = vmatprep.subr.bf16.mxu0 %v555_v1  ;;  %v562_v4 = vld [vmem:[%s214_s25] sm:$0xff]   ;;  %v563_v9 = vld [vmem:[%s214_s25 + $0x8] sm:$0xff]   ;;  %v365_v15 = vld [vmem:[%s683_s2 + $0x18] sm:$0xff] }
  0x10   : > { %526 = vmatprep.mubr.bf16.mxu0 %v562_v4  ;;  %v362_v12 = vld [vmem:[%s683_s2] sm:$0xff]  ;;  %v363_v18 = vld [vmem:[%s683_s2 + $0x8] sm:$0xff] }
  0x12   : > { %513 = vmatpush3.bf16.msra.mxu0 %v555_v1 }
  0x13   : > { %514 = vmatprep.subr.bf16.mxu0 %v556_v2 }
  0x16   : > { %515 = vmatpush3.bf16.msra.mxu0 %v556_v2 }
  0x17   : > { %516 = vmatprep.subr.bf16.mxu0 %v557_v3 }
  0x1a   : > { %517 = vmatpush3.bf16.msra.mxu0 %v557_v3 }
  0x1b   : > { %518 = vmatprep.subr.bf16.mxu0 %v558_v5 }
  0x1e   : > { %519 = vmatpush3.bf16.msra.mxu0 %v558_v5 }
  0x1f   : > { %520 = vmatprep.subr.bf16.mxu0 %v559_v6 }
  0x22   : > { %521 = vmatpush3.bf16.msra.mxu0 %v559_v6 }
  0x23   : > { %522 = vmatprep.subr.bf16.mxu0 %v560_v7 }
  0x26   : > { %523 = vmatpush3.bf16.msra.mxu0 %v560_v7 }
  0x27   : > { %524 = vmatprep.subr.bf16.mxu0 %v561_v8 }
  0x2a   : > { %525 = vmatpush3.bf16.msra.mxu0 %v561_v8 }
  0x2d   : > { %527 = vmatmul.mubr.bf16.vlgmr.msra.gmra.mxu0 %v563_v9 }
  0xed   : > { %v528_v11 = vpop.f32.mrf.mxu0 }
  0xee   : > { %v368_v13 = vadd.f32 %v528_v11, %v364_v10 }
  0xef   : > { %v347_v14 = vpop.f32.mrf.mxu0 }
  0xf0   : > { %372 = vst [vmem:[%s230_s18 + $0x10] sm:$0xff] %v368_v13  ;;  %v366_v16 = vadd.f32 %v362_v12, %v347_v14 }
  0xf1   : > { %v529_v17 = vpop.f32.mrf.mxu0 }
  0xf2   : > { %370 = vst [vmem:[%s230_s18] sm:$0xff] %v366_v16  ;;  %v369_v19 = vadd.f32 %v529_v17, %v365_v15 }
  0xf3   : > { %v350_v20 = vpop.f32.mrf.mxu0 }
  0xf4   : > { %373 = vst [vmem:[%s230_s18 + $0x18] sm:$0xff] %v369_v19  ;;  %v367_v21 = vadd.f32 %v363_v18, %v350_v20 }
  0xf6   : > { %371 = vst [vmem:[%s230_s18 + $0x8] sm:$0xff] %v367_v21 }
  0xf7 PF: > { %s13_s14 = sadd.s32 1, %s586_s14   ;;  %s685_s12 = smov %s582_s13 }
  0xf8   : > { %p10_p5 = scmp.ge.s32.totalorder %s13_s14, 4   ;;  %s686_s13 = smov %s688_s15 }
  0xfa   :  { %12 = sbr.rel (!%p10_p5) target bundleno = 2 (0x2), region = 65 }

</bundles_post_ra>
